<compile_context>
chip_gen: v7x
topology: tpu7x:2x2x1
jax: 0.10.0
libtpu: 0.0.40
codegen_flags: <defaults>
</compile_context>

<pallas_src>
import jax
import jax.numpy as jnp
from jax.experimental import pallas as pl
from jax.experimental.pallas import tpu as pltpu


def _linear_kernel(x_ref, w_ref, b_ref, o_ref):
    # x_ref: [F, TILE_N] VMEM (lane-dense over batch)
    # w_ref: [F, 1]      VMEM (resident across the whole grid)
    # b_ref: [1]         SMEM scalar
    # o_ref: [1, TILE_N] VMEM (lane-dense output -> unmasked stores)
    x = x_ref[...]                                   # [F, TILE_N]
    w = w_ref[...]                                   # [F, 1] broadcast over lanes
    y = jnp.sum(x * w, axis=0, keepdims=True)        # VPU mul + sublane reduce
    o_ref[...] = (y + b_ref[0]).astype(o_ref.dtype)  # scalar bias add on VPU


def linear_forward(x, w, b, *, tile_n=512):
    """y = x @ w.T + b  (nn.Linear(3, 1) forward) via a lane-dense Pallas kernel.

    x: [N, F] float32
    w: [OUT, F] float32 with OUT == 1
    b: [OUT]   float32
    returns [N, OUT] float32
    """
    n, f = x.shape
    out_dim = w.shape[0]
    assert out_dim == 1, "module is nn.Linear(3, 1); OUT must be 1"

    lane = 128
    # Keep the tile a multiple of 128 lanes; don't pad tiny batches past 128.
    n_pad_min = ((n + lane - 1) // lane) * lane
    tile_n = max(lane, (min(tile_n, n_pad_min) // lane) * lane)
    n_pad = ((n + tile_n - 1) // tile_n) * tile_n

    # Wrapper-side layout plumbing (free relative to the kernel):
    #   x -> x_t [F, N_pad] (batch last = lane axis), w -> w_t [F, 1].
    x_t = jnp.zeros((f, n_pad), dtype=jnp.float32).at[:, :n].set(x.T)
    w_t = w.T.astype(jnp.float32)                    # [F, 1], pre-transposed param
    b1 = b.reshape(out_dim).astype(jnp.float32)      # [1] scalar for SMEM

    grid = (n_pad // tile_n,)

    cost = pl.CostEstimate(
        flops=2 * n * f * out_dim,
        transcendentals=0,
        bytes_accessed=4 * (n * f + n * out_dim + f * out_dim + out_dim),
    )

    y_t = pl.pallas_call(
        _linear_kernel,
        out_shape=jax.ShapeDtypeStruct((out_dim, n_pad), jnp.float32),
        grid_spec=pltpu.PrefetchScalarGridSpec(
            num_scalar_prefetch=0,
            grid=grid,
            in_specs=[
                # x tile: (F, TILE_N); F equals the full array dim, TILE_N is a
                # multiple of 128 -> satisfies the (8,128) constraint.
                pl.BlockSpec((f, tile_n), lambda i: (0, i)),
                # w stays resident across all grid steps (constant index_map).
                pl.BlockSpec((f, out_dim), lambda i: (0, 0)),
                # bias: single scalar through SMEM, no VMEM DMA.
                pl.BlockSpec(memory_space=pltpu.MemorySpace.SMEM),
            ],
            out_specs=pl.BlockSpec((out_dim, tile_n), lambda i: (0, i)),
        ),
        compiler_params=pltpu.CompilerParams(
            # Batch tiles are independent -> shard across TCs on v7x megacore.
            dimension_semantics=("parallel",),
        ),
        cost_estimate=cost,
    )(x_t, w_t, b1)

    # Strip batch padding and return in the PyTorch [N, OUT] convention.
    return y_t[:, :n].T


if __name__ == "__main__":
    key = jax.random.PRNGKey(0)
    kx, kw, kb = jax.random.split(key, 3)

    # Small shapes consistent with the module: batch=8, in_features=3, out=1.
    N, F, OUT = 8, 3, 1
    x = jax.random.normal(kx, (N, F), dtype=jnp.float32)

    # Deterministic parameter init mirroring nn.Linear's default:
    # U(-1/sqrt(in_features), 1/sqrt(in_features))
    bound = 1.0 / jnp.sqrt(jnp.float32(F))
    w = jax.random.uniform(kw, (OUT, F), dtype=jnp.float32,
                           minval=-bound, maxval=bound)
    b = jax.random.uniform(kb, (OUT,), dtype=jnp.float32,
                           minval=-bound, maxval=bound)

    y = linear_forward(x, w, b)
    jax.block_until_ready(y)

    # Sanity check against plain-JAX reference.
    y_ref = x @ w.T + b
    assert y.shape == (N, OUT)
    assert jnp.allclose(y, y_ref, atol=1e-5, rtol=1e-5)

    print("KERNEL_OK")
</pallas_src>

<mosaic_0001>
module attributes {stable_mosaic.version = 11 : i64} {
  func.func @_linear_kernel(%arg0: i32, %arg1: memref<3x128xf32, #tpu.memory_space<vmem>>, %arg2: memref<3x1xf32, #tpu.memory_space<vmem>>, %arg3: memref<1xf32, #tpu.memory_space<smem>>, %arg4: memref<1x128xf32, #tpu.memory_space<vmem>>) attributes {dimension_semantics = [#tpu.dimension_semantics<parallel>], iteration_bounds = array<i64: 1>, scalar_prefetch = 0 : i64, scratch_operands = 0 : i64, tpu.core_type = #tpu.core_type<tc>, window_params = [{transform_indices = @transform_0, window_bounds = array<i64: 3, 128>}, {pipeline_mode = #tpu.pipeline_mode<synchronous>, transform_indices = @transform_1, window_bounds = array<i64: 3, 1>}, {transform_indices = @transform_2, window_bounds = array<i64: 1>}, {transform_indices = @transform_3, window_bounds = array<i64: 1, 128>}]} {
    %c0 = arith.constant 0 : index
    %c0_0 = arith.constant 0 : index
    %0 = vector.load %arg1[%c0, %c0_0] : memref<3x128xf32, #tpu.memory_space<vmem>>, vector<3x128xf32>
    %c0_1 = arith.constant 0 : index
    %c0_2 = arith.constant 0 : index
    %1 = vector.load %arg2[%c0_1, %c0_2] : memref<3x1xf32, #tpu.memory_space<vmem>>, vector<3x1xf32>
    %2 = vector.broadcast %1 : vector<3x1xf32> to vector<3x128xf32>
    %3 = arith.mulf %0, %2 : vector<3x128xf32>
    %cst = arith.constant dense<0.000000e+00> : vector<128xf32>
    %4 = vector.multi_reduction <add>, %3, %cst [0] : vector<3x128xf32> to vector<128xf32>
    %5 = vector.shape_cast %4 : vector<128xf32> to vector<1x128xf32>
    %c0_3 = arith.constant 0 : index
    %6 = memref.load %arg3[%c0_3] : memref<1xf32, #tpu.memory_space<smem>>
    %7 = vector.broadcast %6 : f32 to vector<1x128xf32>
    %8 = arith.addf %5, %7 : vector<1x128xf32>
    %c0_4 = arith.constant 0 : index
    %c0_5 = arith.constant 0 : index
    %9 = vector.load %arg4[%c0_4, %c0_5] : memref<1x128xf32, #tpu.memory_space<vmem>>, vector<1x128xf32>
    tpu.vector_store %arg4[%c0_4, %c0_5], %8 {strides = array<i32>} : memref<1x128xf32, #tpu.memory_space<vmem>>, vector<1x128xf32>,
    return
  }
  func.func @transform_0(%arg0: i32) -> (i32, i32) {
    %c0_i32 = arith.constant 0 : i32
    %c0_i32_0 = arith.constant 0 : i32
    return %c0_i32, %arg0 : i32, i32
  }
  func.func @transform_1(%arg0: i32) -> (i32, i32) {
    %c0_i32 = arith.constant 0 : i32
    %c0_i32_0 = arith.constant 0 : i32
    %c0_i32_1 = arith.constant 0 : i32
    return %c0_i32, %c0_i32_0 : i32, i32
  }
  func.func @transform_2(%arg0: i32) -> i32 {
    %c0_i32 = arith.constant 0 : i32
    %c0_i32_0 = arith.constant 0 : i32
    return %c0_i32 : i32
  }
  func.func @transform_3(%arg0: i32) -> (i32, i32) {
    %c0_i32 = arith.constant 0 : i32
    %c0_i32_0 = arith.constant 0 : i32
    return %c0_i32, %arg0 : i32, i32
  }
}

</mosaic_0001>

<bundles_post_ra>
// kernel: tpu_custom_call.1
= control target key start
LH: loop header
LB: loop body
LE: loop exit
PB: predicated region body
PF: predicated region fallthrough
CT: control target
= control target key end

     0   :  { %s120_s0 = inlined_call_operand.vmem [shape: f32[3,128], index: 0, kind: input, shape index: {}]   ;;  %s121_s1 = inlined_call_operand.vmem [shape: f32[3,1], index: 1, kind: input, shape index: {}]   ;;  %s122_s2 = inlined_call_operand.<no memory space> [shape: f32[1], index: 2, kind: input, shape index: {}]   ;;  %s123_s3 = inlined_call_operand.hbm [shape: f32[1,128], index: 3, kind: output, shape index: {}]  }
   0x1   :  { %v17_v0 = vld [vmem:[%s121_s1] sm:$0x7] }
   0x2   :  { %9 = vsyncpa [#allocation4], 0  ;;  %v77_v1 = vmov 0   ;;  %v16_v2 = vld [vmem:[%s120_s0] sm:$0x7]  ;;  %vm24_vm0 = vcmask 1042432   ;;  %v33_v11 = vstv %s122_s2 }
   0x3   :  { %52 = vset.pattern.permute.xlu0 %v77_v1  ;;  %s78_s1 = smov [#allocation3]  }
   0x4   :  { %20 = vperm.xlu0 %52, %v17_v0   ;;  %s42_s18 = sshll.u32 %s78_s1, 4  ;;  %s43_s18 = int_to_ptr.vmem [resolvable:$true] %s42_s18 }
   0x5   :  { %s53_s0 = scalar_lea.vmem %s43_s18, 16  ;;  %s57_s19 = scalar_lea.vmem %s43_s18, 32 }
   0x6   :  { %p54_p0 = scmp.ne.s32.totalorder %s43_s18, %s53_s0  ;;  %p58_p1 = scmp.lt.s32.totalorder %s43_s18, %s43_s18 }
   0x7   :  { %p59_p2 = scmp.lt.s32.totalorder %s57_s19, %s53_s0 }
   0x9   :  { %p60_p3 = por %p59_p2, %p58_p1 }
   0xb   :  { %p61_p4 = pnand %p60_p3, %p54_p0 }
  0x83   :  { %v21_v3 = vpop.permute.xlu0 %20 }
  0x84   :  { %v23_v4 = vmul.f32 %v21_v3, %v16_v2 }
  0x86   :  { %v25_v5 = vsel %vm24_vm0, %v23_v4, 0.0 }
  0x87   :  { %v26_v6 = vrot.slane %v25_v5, 4 }
  0x89   :  { %v27_v7 = vadd.f32 %v26_v6, %v25_v5 }
  0x8b   :  { %v28_v8 = vrot.slane %v27_v7, 2 }
  0x8d   :  { %v29_v9 = vadd.f32 %v28_v8, %v27_v7 }
  0x8f   :  { %v30_v10 = vrot.slane %v29_v9, 1 }
  0x91   :  { %v31_v12 = vadd.f32 %v30_v10, %v29_v9 }
  0x93   :  { %v34_v13 = vadd.f32 %v33_v11, %v31_v12 }
  0x95   :  { %35 = vst [vmem:[#allocation3] sm:$0x1] %v34_v13 }
  0x96   :  { %64 = shalt.err (!%p61_p4)
}
  0x97   :  { %s65_s22 = scalar_lea.hbm %s123_s3, 16 }
  0x98   :  { %p66_p5 = scmp.ne.s32.totalorder %s123_s3, %s65_s22  ;;  %p69_p6 = scmp.lt.u32.totalorder %s65_s22, %s123_s3 }
  0x9a   :  { %p71_p7 = pnand %p69_p6, %p66_p5 }
  0x9c   :  { %74 = shalt.err (!%p71_p7)
}
  0x9d   :  { %45 = dma.vmem_to_hbm [thread:$0]  %s43_s18, 16, %s123_s3, [#allocation4]  }
  0x9e   :  { %75 = dma.done.wait [#allocation4], 16  }
  0x9f   :  { %76 = vsyncadd [#allocation4], 4294967280 }
  0xa0   :  { %49 = vsyncpa [#allocation4], 1 }

</bundles_post_ra>
